<compile_context>
chip_gen: v7x
topology: tpu7x:2x2x1
jax: 0.10.0
libtpu: 0.0.40
codegen_flags: <defaults>
</compile_context>

<pallas_src>
import jax
import jax.numpy as jnp
from jax.experimental import pallas as pl
from jax.experimental.pallas import tpu as pltpu

_LANE = 128
# Lanes per spatial tile. VMEM per buffer ~= 8 (padded sublanes) * tile_s * 4 B
# ~= 2 MiB at 64K lanes -> 4x tile (in + out, double-buffered) ~= 8 MiB total,
# safe on v5e's 16 MiB default scoped limit and v7x's 64 MiB physical VMEM.
_MAX_TILE_LANES = 64 * 1024


def _round_up(x: int, m: int) -> int:
    return (x + m - 1) // m * m


def _normalize_kernel(scale_ref, bias_ref, img_ref, out_ref):
    # scale_ref / bias_ref : VMEM (C, 1) f32, broadcast along the lane axis.
    # img_ref / out_ref    : VMEM (C, TILE_S) tiles of the flattened image.
    x = img_ref[...].astype(jnp.float32)
    out_ref[...] = (x * scale_ref[...] + bias_ref[...]).astype(out_ref.dtype)


def normalize(image: jax.Array, mean, std) -> jax.Array:
    """Channel-wise normalization of a (C, *spatial) image (no batch dim)."""
    # Mirror the PyTorch module's constructor checks where possible.
    if isinstance(mean, (tuple, list)) and isinstance(std, (tuple, list)):
        assert len(mean) == len(std), "Mean and std should have the same length"
        assert all(s > 0 for s in std), "std must be strictly positive"

    mean = jnp.asarray(mean, dtype=jnp.float32)
    std = jnp.asarray(std, dtype=jnp.float32)

    c = image.shape[0]
    assert c == mean.shape[0], (
        f"image has {c} channels but mean has {mean.shape[0]} entries"
    )
    assert mean.shape == std.shape
    assert jnp.issubdtype(image.dtype, jnp.floating), (
        "Normalize expects a floating-point image"
    )

    orig_shape = image.shape
    spatial = orig_shape[1:]
    s = 1
    for d in spatial:
        s *= d

    # Lane-dense layout: whole per-channel spatial volume on the lane axis.
    img2d = image.reshape(c, s)

    # Fold the divide into a multiply-add (computed once, outside the kernel).
    scale = (1.0 / std).reshape(c, 1)          # 1/std
    bias = (-mean / std).reshape(c, 1)         # -mean/std

    # Spatial tiling: multiple of 128 lanes, capped at ~2 MiB VMEM per buffer.
    # For small images this collapses to a single grid step (no wasted steps).
    tile_s = min(_round_up(s, _LANE), _MAX_TILE_LANES)
    grid = (pl.cdiv(s, tile_s),)

    out = pl.pallas_call(
        _normalize_kernel,
        out_shape=jax.ShapeDtypeStruct((c, s), image.dtype),
        grid=grid,
        in_specs=[
            pl.BlockSpec((c, 1), lambda si: (0, 0)),        # scale (full)
            pl.BlockSpec((c, 1), lambda si: (0, 0)),        # bias  (full)
            pl.BlockSpec((c, tile_s), lambda si: (0, si)),  # image tile
        ],
        out_specs=pl.BlockSpec((c, tile_s), lambda si: (0, si)),
        compiler_params=pltpu.CompilerParams(
            dimension_semantics=("parallel",),
        ),
    )(scale, bias, img2d)

    return out.reshape(orig_shape)


if __name__ == "__main__":
    key = jax.random.PRNGKey(0)

    # 2D image: channel-first, no batch dim (as in the PyTorch transform).
    C, H, W = 4, 16, 16
    image = jax.random.normal(key, (C, H, W), dtype=jnp.float32) * 3.0 + 1.5
    mean = tuple(0.1 * (i + 1) for i in range(C))     # (0.1, 0.2, 0.3, 0.4)
    std = tuple(0.5 + 0.25 * i for i in range(C))     # (0.5, 0.75, 1.0, 1.25)

    out = jax.block_until_ready(normalize(image, mean, std))
    mean_a = jnp.asarray(mean, jnp.float32).reshape(C, 1, 1)
    std_a = jnp.asarray(std, jnp.float32).reshape(C, 1, 1)
    ref = (image - mean_a) / std_a
    assert out.shape == image.shape and out.dtype == image.dtype
    assert jnp.allclose(out, ref, atol=1e-5, rtol=1e-5)

    # 3D volume whose flattened spatial size is NOT a multiple of 128 —
    # exercises the masked final partial block of the lane-dense layout.
    C3, D3, H3, W3 = 3, 4, 10, 10
    vol = jax.random.normal(jax.random.PRNGKey(1), (C3, D3, H3, W3),
                            dtype=jnp.float32)
    mean3 = (0.2, -0.1, 0.05)
    std3 = (1.5, 0.8, 2.0)
    out3 = jax.block_until_ready(normalize(vol, mean3, std3))
    ref3 = (vol - jnp.asarray(mean3, jnp.float32)[:, None, None, None]) \
        / jnp.asarray(std3, jnp.float32)[:, None, None, None]
    assert out3.shape == vol.shape and out3.dtype == vol.dtype
    assert jnp.allclose(out3, ref3, atol=1e-5, rtol=1e-5)

    # TODO(synk): the PyTorch forward also returns the BoxList `target`
    # unchanged; that is metadata plumbing with no Pallas equivalent.
    print("KERNEL_OK")
</pallas_src>

<mosaic_0001>
module attributes {stable_mosaic.version = 11 : i64} {
  func.func @_normalize_kernel(%arg0: i32, %arg1: memref<4x1xf32, #tpu.memory_space<vmem>>, %arg2: memref<4x1xf32, #tpu.memory_space<vmem>>, %arg3: memref<4x256xf32, #tpu.memory_space<vmem>>, %arg4: memref<4x256xf32, #tpu.memory_space<vmem>>) attributes {dimension_semantics = [#tpu.dimension_semantics<parallel>], iteration_bounds = array<i64: 1>, scalar_prefetch = 0 : i64, scratch_operands = 0 : i64, tpu.core_type = #tpu.core_type<tc>, window_params = [{pipeline_mode = #tpu.pipeline_mode<synchronous>, transform_indices = @transform_0, window_bounds = array<i64: 4, 1>}, {pipeline_mode = #tpu.pipeline_mode<synchronous>, transform_indices = @transform_1, window_bounds = array<i64: 4, 1>}, {transform_indices = @transform_2, window_bounds = array<i64: 4, 256>}, {transform_indices = @transform_3, window_bounds = array<i64: 4, 256>}]} {
    %c0 = arith.constant 0 : index
    %c0_0 = arith.constant 0 : index
    %0 = vector.load %arg3[%c0, %c0_0] : memref<4x256xf32, #tpu.memory_space<vmem>>, vector<4x256xf32>
    %c0_1 = arith.constant 0 : index
    %c0_2 = arith.constant 0 : index
    %1 = vector.load %arg1[%c0_1, %c0_2] : memref<4x1xf32, #tpu.memory_space<vmem>>, vector<4x1xf32>
    %2 = vector.broadcast %1 : vector<4x1xf32> to vector<4x256xf32>
    %3 = arith.mulf %0, %2 : vector<4x256xf32>
    %c0_3 = arith.constant 0 : index
    %c0_4 = arith.constant 0 : index
    %4 = vector.load %arg2[%c0_3, %c0_4] : memref<4x1xf32, #tpu.memory_space<vmem>>, vector<4x1xf32>
    %5 = vector.broadcast %4 : vector<4x1xf32> to vector<4x256xf32>
    %6 = arith.addf %3, %5 : vector<4x256xf32>
    %c0_5 = arith.constant 0 : index
    %c0_6 = arith.constant 0 : index
    %7 = vector.load %arg4[%c0_5, %c0_6] : memref<4x256xf32, #tpu.memory_space<vmem>>, vector<4x256xf32>
    tpu.vector_store %arg4[%c0_5, %c0_6], %6 {strides = array<i32>} : memref<4x256xf32, #tpu.memory_space<vmem>>, vector<4x256xf32>,
    return
  }
  func.func @transform_0(%arg0: i32) -> (i32, i32) {
    %c0_i32 = arith.constant 0 : i32
    %c0_i32_0 = arith.constant 0 : i32
    %c0_i32_1 = arith.constant 0 : i32
    return %c0_i32, %c0_i32_0 : i32, i32
  }
  func.func @transform_1(%arg0: i32) -> (i32, i32) {
    %c0_i32 = arith.constant 0 : i32
    %c0_i32_0 = arith.constant 0 : i32
    %c0_i32_1 = arith.constant 0 : i32
    return %c0_i32, %c0_i32_0 : i32, i32
  }
  func.func @transform_2(%arg0: i32) -> (i32, i32) {
    %c0_i32 = arith.constant 0 : i32
    %c0_i32_0 = arith.constant 0 : i32
    return %c0_i32, %arg0 : i32, i32
  }
  func.func @transform_3(%arg0: i32) -> (i32, i32) {
    %c0_i32 = arith.constant 0 : i32
    %c0_i32_0 = arith.constant 0 : i32
    return %c0_i32, %arg0 : i32, i32
  }
}

</mosaic_0001>

<bundles_post_ra>
// kernel: tpu_custom_call.1
= control target key start
LH: loop header
LB: loop body
LE: loop exit
PB: predicated region body
PF: predicated region fallthrough
CT: control target
= control target key end

     0   :  { %v87_v1 = vmov 0   ;;  %s131_s0 = inlined_call_operand.vmem [shape: f32[4,1], index: 0, kind: input, shape index: {}]   ;;  %s132_s1 = inlined_call_operand.vmem [shape: f32[4,1], index: 1, kind: input, shape index: {}]   ;;  %s133_s2 = inlined_call_operand.vmem [shape: f32[4,256], index: 2, kind: input, shape index: {}]   ;;  %s134_s3 = inlined_call_operand.hbm [shape: f32[4,256], index: 3, kind: output, shape index: {}]  }
   0x1   :  { %v16_v0 = vld [vmem:[%s131_s0] sm:$0xf]  ;;  %62 = vset.pattern.permute.xlu0 %v87_v1 }
   0x2   :  { %8 = vsyncpa [#allocation3], 0  ;;  %19 = vperm.xlu0 %62, %v16_v0   ;;  %v30_v2 = vld [vmem:[%s132_s1] sm:$0xf]  ;;  %v88_v3 = vmov 839922192   ;;  %v24_v5 = vlaneseq }
   0x3   :  { %v22_v4 = vunpack.c.l.s4 %v88_v3  ;;  %v15_v11 = vld [vmem:[%s133_s2] sm:$0xff]  ;;  %s89_s0 = smov [#allocation2]  }
   0x4   :  { %v25_v7 = vshrl.u32 %v24_v5, 7  ;;  %s51_s18 = sshll.u32 %s89_s0, 4  ;;  %s52_s18 = int_to_ptr.vmem [resolvable:$true] %s51_s18 }
   0x5   :  { %v23_v6 = vunpack.c.0.s8 %v22_v4  ;;  %s63_s1 = scalar_lea.vmem %s52_s18, 128  ;;  %p68_p1 = scmp.lt.s32.totalorder %s52_s18, %s52_s18 }
   0x6   :  { %33 = vperm.xlu0 %62, %v30_v2   ;;  %p64_p0 = scmp.ne.s32.totalorder %s52_s18, %s63_s1  ;;  %p69_p2 = scmp.lt.s32.totalorder %s63_s1, %s63_s1 }
   0x7   :  { %v26_v8 = vsub.s32 %v23_v6, %v25_v7 }
   0x8   :  { %p70_p3 = por %p69_p2, %p68_p1 }
   0xa   :  { %p71_p4 = pnand %p70_p3, %p64_p0 }
  0x81   :  { %v20_v9 = vpop.permute.xlu0 %19 }
  0x82   :  { %v27_v10 = vrot.slane %v20_v9, %v26_v8 }
  0x84   :  { %v29_v13 = vmul.f32 %v27_v10, %v15_v11 }
  0x85   :  { %v34_v12 = vpop.permute.xlu0 %33 }
  0x86   :  { %v41_v14 = vrot.slane %v34_v12, %v26_v8 }
  0x88   :  { %v43_v15 = vadd.f32 %v41_v14, %v29_v13 }
  0x8a   :  { %44 = vst [vmem:[#allocation2] sm:$0xff] %v43_v15 }
  0x8b   :  { %74 = shalt.err (!%p71_p4)
}
  0x8c   :  { %s75_s21 = scalar_lea.hbm %s134_s3, 128 }
  0x8d   :  { %p76_p5 = scmp.ne.s32.totalorder %s134_s3, %s75_s21  ;;  %p79_p6 = scmp.lt.u32.totalorder %s75_s21, %s134_s3 }
  0x8f   :  { %p81_p7 = pnand %p79_p6, %p76_p5 }
  0x91   :  { %84 = shalt.err (!%p81_p7)
}
  0x92   :  { %54 = dma.vmem_to_hbm [thread:$0]  %s52_s18, 128, %s134_s3, [#allocation3]  }
  0x93   :  { %85 = dma.done.wait [#allocation3], 128  }
  0x94   :  { %86 = vsyncadd [#allocation3], 4294967168 }
  0x95   :  { %58 = vsyncpa [#allocation3], 1 }

</bundles_post_ra>
